<compile_context>
chip_gen: v5e
topology: v5e:2x2
jax: 0.10.0
libtpu: 0.0.40
codegen_flags: <defaults>
</compile_context>

<pallas_src>
import functools

import jax
import jax.numpy as jnp
from jax.experimental import pallas as pl
from jax.experimental.pallas import tpu as pltpu


def _round_up(x, m):
    return ((x + m - 1) // m) * m


def _dueling_head_kernel(h_ref, w_ref, b_ref, seg_ref, segT_ref, out_ref):
    """One batch tile: packed matmul + bias + per-action softmax over atoms.

    h_ref:    (TB, in_size)   compute dtype (bf16/f32)  batch tile
    w_ref:    (in_size, AKp)  compute dtype             folded adv+value weights (resident)
    b_ref:    (1, AKp)        f32                       folded bias, -1e9 in padding (resident)
    seg_ref:  (AKp, Ap)       f32   S[c, a] = 1 iff packed column c belongs to action a
    segT_ref: (Ap, AKp)       f32   S^T
    out_ref:  (TB, AKp)       f32   lane-dense per-(action, atom) probabilities
    """
    # Single MXU matmul for both streams (dueling correction pre-folded) + bias.
    logits = jnp.dot(h_ref[...], w_ref[...],
                     preferred_element_type=jnp.float32) + b_ref[...]

    # One per-row max over the whole slab as softmax stabilizer.
    # Padded columns hold -1e9 so they never win the max and exp() -> 0.
    # (Edge case: an action whose logits sit astronomically below the global
    #  max could underflow its denominator; guarded by the jnp.maximum below.)
    m = jnp.max(logits, axis=1, keepdims=True)                  # XLU, 1 reduce/row
    e = jnp.exp(logits - m)                                     # EUP

    # Per-action denominators via a tiny constant matmul on the MXU, then
    # broadcast the exact reciprocals back to all columns of each action.
    d = jnp.dot(e, seg_ref[...], preferred_element_type=jnp.float32)     # (TB, Ap)
    inv = 1.0 / jnp.maximum(d, 1e-30)                            # exact divide
    inv_b = jnp.dot(inv, segT_ref[...], preferred_element_type=jnp.float32)  # (TB, AKp)

    # Single lane-dense store of the whole slab (padded columns come out 0).
    out_ref[...] = (e * inv_b).astype(out_ref.dtype)


def _pack_params(wa_torch, ba, wv_torch, bv, n_cols_padded):
    """Fold the whole dueling combine into one packed matmul (offline, cacheable).

    final_logit[b, a, k] = (wa[a,k] - mean_a' wa[a',k]) . h_a
                         + (ba[a,k] - mean_a' ba[a',k])
                         +  wv[k] . h_v + bv[k]
    which is linear in h, so it is a single matmul with block-structured weights.

    wa_torch: (A*K, half)  a_stream.weight (torch layout: out, in)
    ba:       (A*K,)       a_stream.bias
    wv_torch: (K, half)    v_stream.weight
    bv:       (K,)         v_stream.bias
    Returns w_packed (in_size, AKp), b_packed (1, AKp); padding: 0 weight, -1e9 bias.
    """
    AK, half = wa_torch.shape
    K = wv_torch.shape[0]
    A = AK // K
    in_size = 2 * half

    wa3 = wa_torch.astype(jnp.float32).reshape(A, K, half)
    wa_c = wa3 - jnp.mean(wa3, axis=0, keepdims=True)            # centered advantage
    ba2 = ba.astype(jnp.float32).reshape(A, K)
    ba_c = ba2 - jnp.mean(ba2, axis=0, keepdims=True)

    w = jnp.zeros((in_size, n_cols_padded), jnp.float32)
    w = w.at[:half, :AK].set(wa_c.reshape(AK, half).T)           # advantage block
    w = w.at[half:, :AK].set(jnp.tile(wv_torch.astype(jnp.float32).T, (1, A)))  # value block

    b = jnp.full((1, n_cols_padded), -1e9, jnp.float32)          # padding: never wins row max
    b = b.at[0, :AK].set(ba_c.reshape(AK) + jnp.tile(bv.astype(jnp.float32), A))
    return w, b


def _make_segment_matrices(n_actions, n_atoms, n_cols_padded, n_actions_padded):
    """S[c, a] = 1 iff packed column c = a*K + k for some atom k (real columns only)."""
    AK = n_actions * n_atoms
    col = jnp.arange(n_cols_padded)[:, None]
    act = jnp.arange(n_actions_padded)[None, :]
    seg = jnp.where((col // n_atoms == act) & (col < AK), 1.0, 0.0).astype(jnp.float32)
    return seg, seg.T


def distributional_dueling_head(h, wa_torch, ba, wv_torch, bv, z_values,
                                *, tile_b=512, compute_dtype=jnp.bfloat16):
    """h: (B, in_size); torch-layout Linear params; returns (probs (B, A, K), z_values)."""
    B, in_size = h.shape
    AK, half = wa_torch.shape
    K = wv_torch.shape[0]
    A = AK // K
    assert in_size == 2 * half and AK == A * K

    AKp = _round_up(AK, 128)     # lane-dense packed / output columns
    Ap = _round_up(A, 128)       # lane-dense per-action denominator columns

    w_packed, b_packed = _pack_params(wa_torch, ba, wv_torch, bv, AKp)
    seg, segT = _make_segment_matrices(A, K, AKp, Ap)

    # Matmul operands in bf16 (f32 accumulate) -- kernel is HBM-bound on h.
    h_mm = h.astype(compute_dtype)
    w_mm = w_packed.astype(compute_dtype)

    # Batch tile: full batch if small, else a multiple-of-8 tile.  512 keeps
    # double-buffered h/out tiles + resident weights within the scoped VMEM
    # budget on v5e/v6e/v7x for realistic in_size (shrink on v7x / grow on
    # v6e per generation if profiling shows headroom).
    tb = B if B <= tile_b else tile_b
    grid = (pl.cdiv(B, tb),)

    itemsize = jnp.dtype(compute_dtype).itemsize
    cost = pl.CostEstimate(
        flops=2 * B * in_size * AKp + 2 * (2 * B * AKp * Ap),
        transcendentals=B * AKp,
        bytes_accessed=(B * in_size * itemsize + in_size * AKp * itemsize
                        + AKp * 4 + 2 * AKp * Ap * 4 + B * AKp * 4),
    )

    out_2d = pl.pallas_call(
        _dueling_head_kernel,
        out_shape=jax.ShapeDtypeStruct((B, AKp), jnp.float32),
        grid_spec=pltpu.PrefetchScalarGridSpec(
            num_scalar_prefetch=0,
            grid=grid,
            in_specs=[
                pl.BlockSpec((tb, in_size), lambda i: (i, 0)),    # batch-tiled h
                pl.BlockSpec((in_size, AKp), lambda i: (0, 0)),   # resident packed weights
                pl.BlockSpec((1, AKp), lambda i: (0, 0)),         # resident packed bias
                pl.BlockSpec((AKp, Ap), lambda i: (0, 0)),        # resident segment matrix
                pl.BlockSpec((Ap, AKp), lambda i: (0, 0)),        # resident segment matrix^T
            ],
            out_specs=pl.BlockSpec((tb, AKp), lambda i: (i, 0)),  # lane-dense output slab
        ),
        compiler_params=pltpu.CompilerParams(
            dimension_semantics=("parallel",),
            vmem_limit_bytes=64 * 1024 * 1024,   # v5e scoped default is only 16 MiB
        ),
        cost_estimate=cost,
    )(h_mm, w_mm, b_packed, seg, segT)

    probs = out_2d[:, :AK].reshape(B, A, K)   # drop lane padding; free reshape
    # TODO(synk): pfrl.action_value.DistributionalDiscreteActionValue wrapper has
    # no Pallas equivalent; return the (probs, z_values) pair it would hold.
    return probs, z_values


def _reference_forward(h, wa_torch, ba, wv_torch, bv, z_values, n_actions, n_atoms):
    """Pure-JAX mirror of the PyTorch forward (torch Linear weight layout)."""
    B, in_size = h.shape
    half = in_size // 2
    h_a, h_v = h[:, :half], h[:, half:]
    a = (h_a @ wa_torch.T + ba).reshape(B, n_actions, n_atoms)
    a = a - a.mean(axis=1, keepdims=True)
    v = (h_v @ wv_torch.T + bv).reshape(B, 1, n_atoms)
    return jax.nn.softmax(a + v, axis=2), z_values


if __name__ == "__main__":
    B = 8
    in_size = 64
    half = in_size // 2
    n_actions = 4
    n_atoms = 16
    v_min, v_max = -10.0, 10.0

    key = jax.random.PRNGKey(0)
    k_h, k_wa, k_ba, k_wv, k_bv = jax.random.split(key, 5)

    # Deterministic synthetic parameters (torch nn.Linear layout: (out, in)).
    bound = 1.0 / (half ** 0.5)
    wa_torch = jax.random.uniform(k_wa, (n_actions * n_atoms, half),
                                  jnp.float32, -bound, bound)
    ba = jax.random.uniform(k_ba, (n_actions * n_atoms,), jnp.float32, -bound, bound)
    wv_torch = jax.random.uniform(k_wv, (n_atoms, half), jnp.float32, -bound, bound)
    bv = jax.random.uniform(k_bv, (n_atoms,), jnp.float32, -bound, bound)

    z_values = jnp.linspace(v_min, v_max, n_atoms, dtype=jnp.float32)
    h = jax.random.normal(k_h, (B, in_size), jnp.float32)

    probs, z_out = distributional_dueling_head(h, wa_torch, ba, wv_torch, bv, z_values)
    probs = jax.block_until_ready(probs)
    z_out = jax.block_until_ready(z_out)

    # Check against a pure-JAX f32 mirror of the PyTorch forward.
    probs_ref, z_ref = _reference_forward(
        h, wa_torch, ba, wv_torch, bv, z_values, n_actions, n_atoms)
    assert probs.shape == (B, n_actions, n_atoms)
    # Tolerance covers the bf16 matmul operands + reduced-precision f32 MXU passes.
    assert jnp.allclose(probs, probs_ref, atol=5e-3, rtol=5e-3), \
        float(jnp.max(jnp.abs(probs - probs_ref)))
    # Exact (non-approx) normalization: per-action rows sum to 1 to f32 precision.
    assert jnp.allclose(jnp.sum(probs, axis=2), 1.0, atol=1e-4)
    assert jnp.allclose(z_out, z_ref)

    print("KERNEL_OK")
</pallas_src>

<mosaic_0001>
module attributes {stable_mosaic.version = 11 : i64} {
  func.func @_dueling_head_kernel(%arg0: i32, %arg1: memref<8x64xbf16, #tpu.memory_space<vmem>>, %arg2: memref<64x128xbf16, #tpu.memory_space<vmem>>, %arg3: memref<1x128xf32, #tpu.memory_space<vmem>>, %arg4: memref<128x128xf32, #tpu.memory_space<vmem>>, %arg5: memref<128x128xf32, #tpu.memory_space<vmem>>, %arg6: memref<8x128xf32, #tpu.memory_space<vmem>>) attributes {dimension_semantics = [#tpu.dimension_semantics<parallel>], iteration_bounds = array<i64: 1>, scalar_prefetch = 0 : i64, scratch_operands = 0 : i64, tpu.core_type = #tpu.core_type<tc>, window_params = [{transform_indices = @transform_0, window_bounds = array<i64: 8, 64>}, {pipeline_mode = #tpu.pipeline_mode<synchronous>, transform_indices = @transform_1, window_bounds = array<i64: 64, 128>}, {pipeline_mode = #tpu.pipeline_mode<synchronous>, transform_indices = @transform_2, window_bounds = array<i64: 1, 128>}, {pipeline_mode = #tpu.pipeline_mode<synchronous>, transform_indices = @transform_3, window_bounds = array<i64: 128, 128>}, {pipeline_mode = #tpu.pipeline_mode<synchronous>, transform_indices = @transform_4, window_bounds = array<i64: 128, 128>}, {transform_indices = @transform_5, window_bounds = array<i64: 8, 128>}]} {
    %c0 = arith.constant 0 : index
    %c0_0 = arith.constant 0 : index
    %0 = vector.load %arg1[%c0, %c0_0] : memref<8x64xbf16, #tpu.memory_space<vmem>>, vector<8x64xbf16>
    %c0_1 = arith.constant 0 : index
    %c0_2 = arith.constant 0 : index
    %1 = vector.load %arg2[%c0_1, %c0_2] : memref<64x128xbf16, #tpu.memory_space<vmem>>, vector<64x128xbf16>
    %cst = arith.constant dense<0.000000e+00> : vector<8x128xf32>
    %2 = tpu.matmul %0, %1, %cst {dimension_numbers = #tpu.dot_dimension_numbers<[1], [0], [0], [1], [0, 0, 1, 1], [], []>} : vector<8x64xbf16>, vector<64x128xbf16>, vector<8x128xf32> -> vector<8x128xf32>
    %c0_3 = arith.constant 0 : index
    %c0_4 = arith.constant 0 : index
    %3 = vector.load %arg3[%c0_3, %c0_4] : memref<1x128xf32, #tpu.memory_space<vmem>>, vector<1x128xf32>
    %4 = vector.broadcast %3 : vector<1x128xf32> to vector<8x128xf32>
    %5 = arith.addf %2, %4 : vector<8x128xf32>
    %cst_5 = arith.constant dense<0xFF800000> : vector<8xf32>
    %6 = vector.multi_reduction <maximumf>, %5, %cst_5 [1] : vector<8x128xf32> to vector<8xf32>
    %7 = vector.shape_cast %6 : vector<8xf32> to vector<8x1xf32>
    %8 = vector.broadcast %7 : vector<8x1xf32> to vector<8x128xf32>
    %9 = arith.subf %5, %8 : vector<8x128xf32>
    %10 = math.exp %9 : vector<8x128xf32>
    %c0_6 = arith.constant 0 : index
    %c0_7 = arith.constant 0 : index
    %11 = vector.load %arg4[%c0_6, %c0_7] : memref<128x128xf32, #tpu.memory_space<vmem>>, vector<128x128xf32>
    %cst_8 = arith.constant dense<0.000000e+00> : vector<8x128xf32>
    %12 = tpu.matmul %10, %11, %cst_8 {dimension_numbers = #tpu.dot_dimension_numbers<[1], [0], [0], [1], [0, 0, 1, 1], [], []>} : vector<8x128xf32>, vector<128x128xf32>, vector<8x128xf32> -> vector<8x128xf32>
    %cst_9 = arith.constant 1.000000e-30 : f32
    %13 = vector.broadcast %cst_9 : f32 to vector<8x128xf32>
    %14 = arith.maximumf %12, %13 : vector<8x128xf32>
    %cst_10 = arith.constant 1.000000e+00 : f32
    %15 = vector.broadcast %cst_10 : f32 to vector<8x128xf32>
    %16 = arith.divf %15, %14 : vector<8x128xf32>
    %c0_11 = arith.constant 0 : index
    %c0_12 = arith.constant 0 : index
    %17 = vector.load %arg5[%c0_11, %c0_12] : memref<128x128xf32, #tpu.memory_space<vmem>>, vector<128x128xf32>
    %cst_13 = arith.constant dense<0.000000e+00> : vector<8x128xf32>
    %18 = tpu.matmul %16, %17, %cst_13 {dimension_numbers = #tpu.dot_dimension_numbers<[1], [0], [0], [1], [0, 0, 1, 1], [], []>} : vector<8x128xf32>, vector<128x128xf32>, vector<8x128xf32> -> vector<8x128xf32>
    %19 = arith.mulf %10, %18 : vector<8x128xf32>
    %c0_14 = arith.constant 0 : index
    %c0_15 = arith.constant 0 : index
    %20 = vector.load %arg6[%c0_14, %c0_15] : memref<8x128xf32, #tpu.memory_space<vmem>>, vector<8x128xf32>
    tpu.vector_store %arg6[%c0_14, %c0_15], %19 {strides = array<i32>} : memref<8x128xf32, #tpu.memory_space<vmem>>, vector<8x128xf32>,
    return
  }
  func.func @transform_0(%arg0: i32) -> (i32, i32) {
    %c0_i32 = arith.constant 0 : i32
    %c0_i32_0 = arith.constant 0 : i32
    return %arg0, %c0_i32 : i32, i32
  }
  func.func @transform_1(%arg0: i32) -> (i32, i32) {
    %c0_i32 = arith.constant 0 : i32
    %c0_i32_0 = arith.constant 0 : i32
    %c0_i32_1 = arith.constant 0 : i32
    return %c0_i32, %c0_i32_0 : i32, i32
  }
  func.func @transform_2(%arg0: i32) -> (i32, i32) {
    %c0_i32 = arith.constant 0 : i32
    %c0_i32_0 = arith.constant 0 : i32
    %c0_i32_1 = arith.constant 0 : i32
    return %c0_i32, %c0_i32_0 : i32, i32
  }
  func.func @transform_3(%arg0: i32) -> (i32, i32) {
    %c0_i32 = arith.constant 0 : i32
    %c0_i32_0 = arith.constant 0 : i32
    %c0_i32_1 = arith.constant 0 : i32
    return %c0_i32, %c0_i32_0 : i32, i32
  }
  func.func @transform_4(%arg0: i32) -> (i32, i32) {
    %c0_i32 = arith.constant 0 : i32
    %c0_i32_0 = arith.constant 0 : i32
    %c0_i32_1 = arith.constant 0 : i32
    return %c0_i32, %c0_i32_0 : i32, i32
  }
  func.func @transform_5(%arg0: i32) -> (i32, i32) {
    %c0_i32 = arith.constant 0 : i32
    %c0_i32_0 = arith.constant 0 : i32
    return %arg0, %c0_i32 : i32, i32
  }
}

</mosaic_0001>

<bundles_post_ra>
// kernel: tpu_custom_call.1
= control target key start
LH: loop header
LB: loop body
LE: loop exit
PB: predicated region body
PF: predicated region fallthrough
CT: control target
= control target key end

     0   :  { %10 = vsyncpa [#allocation3], 0  ;;  %s471_s0 = inlined_call_operand.hbm [shape: bf16[8,64], index: 0, kind: input, shape index: {}]   ;;  %s472_s1 = inlined_call_operand.hbm [shape: bf16[64,128], index: 1, kind: input, shape index: {}]   ;;  %s473_s2 = inlined_call_operand.vmem [shape: f32[1,128], index: 2, kind: input, shape index: {}]   ;;  %s474_s3 = inlined_call_operand.hbm [shape: f32[128,128], index: 3, kind: input, shape index: {}]   ;;  %s475_s4 = inlined_call_operand.hbm [shape: f32[128,128], index: 4, kind: input, shape index: {}]   ;;  %s476_s5 = inlined_call_operand.hbm [shape: f32[8,128], index: 5, kind: output, shape index: {}]  }
   0x1   :  { %11 = vsyncpa [#allocation6], 0 }
   0x2   :  { %12 = vsyncpa [#allocation9], 0  ;;  %s29_s20 = sshll.u32 %s472_s1, 4  ;;  %s30_s20 = int_to_ptr.hbm [resolvable:$true] %s29_s20 }
   0x3   :  { %13 = vsyncpa [#allocation4], 0  ;;  %s414_s21 = smov [#allocation5]   ;;  %s19_s25 = sshll.u32 %s471_s0, 4  ;;  %s20_s25 = int_to_ptr.hbm [resolvable:$true] %s19_s25 }
   0x4   :  { %s31_s22 = sshll.u32 %s414_s21, 4  ;;  %s415_s26 = smov 64   ;;  %s32_s22 = int_to_ptr.vmem [resolvable:$true] %s31_s22 }
   0x5   :  { %s416_s27 = smov 4   ;;  %s417_s28 = smov [#allocation2]  }
   0x6   :  { %37 = dma.hbm_to_vmem [thread:$0]  %s30_s20, 512, %s32_s22, [#allocation6], %s415_s26, %s415_s26, %s416_s27  }
   0x7   :  { %s21_s29 = sshll.u32 %s417_s28, 4  ;;  %s44_s7 = sshll.u32 %s474_s3, 4  ;;  %s22_s29 = int_to_ptr.vmem [resolvable:$true] %s21_s29  ;;  %s45_s7 = int_to_ptr.hbm [resolvable:$true] %s44_s7 }
   0x8   :  { %24 = dma.hbm_to_vmem [thread:$0]  %s20_s25, 64, %s22_s29, [#allocation3]  }
   0x9   :  { %s418_s1 = smov [#allocation7]   ;;  %s57_s0 = sshll.u32 %s475_s4, 4  ;;  %s58_s0 = int_to_ptr.hbm [resolvable:$true] %s57_s0 }
   0xa   :  { %s46_s8 = sshll.u32 %s418_s1, 4  ;;  %s419_s11 = smov 128   ;;  %s47_s8 = int_to_ptr.vmem [resolvable:$true] %s46_s8 }
   0xb   :  { %s420_s12 = smov 8   ;;  %s421_s13 = smov [#allocation8]  }
   0xc   :  { %52 = dma.hbm_to_vmem [thread:$0]  %s45_s7, 2048, %s47_s8, [#allocation6], %s419_s11, %s419_s11, %s420_s12  }
   0xd   :  { %s59_s14 = sshll.u32 %s421_s13, 4  ;;  %s60_s14 = int_to_ptr.vmem [resolvable:$true] %s59_s14 }
   0xe   :  { %65 = dma.hbm_to_vmem [thread:$0]  %s58_s0, 2048, %s60_s14, [#allocation9], %s419_s11, %s419_s11, %s420_s12  }
   0xf   :  { %406 = dma.done.wait [#allocation3], 64  }
  0x10   :  { %407 = vsyncadd [#allocation3], 4294967232 }
  0x11   :  { %408 = dma.done.wait [#allocation6], 2560  }
  0x12   :  { %409 = vsyncadd [#allocation6], 4294964736 }
  0x13   :  { %410 = dma.done.wait [#allocation9], 2048  }
  0x14   :  { %411 = vsyncadd [#allocation9], 4294965248  ;;  %v271_v0 = vld [vmem:[#allocation5 + $0x18] sm:$0xff]  ;;  %v270_v1 = vld [vmem:[#allocation5 + $0x10] sm:$0xff]  ;;  %vm120_vm0 = vcmask 523264   ;;  %s239_s18 = sshll.u32 %s476_s5, 4  ;;  %s240_s18 = int_to_ptr.hbm [resolvable:$true] %s239_s18 }
  0x15   :  { %128 = vmatpush.bf16.msra.mxu0 %v271_v0  ;;  %v269_v2 = vld [vmem:[#allocation5 + $0x8] sm:$0xff]  ;;  %v268_v3 = vld [vmem:[#allocation5] sm:$0xff]  ;;  %v83_v4 = vld [vmem:[#allocation2] sm:$0xf] }
  0x16   :  { %v157_v5 = vld [vmem:[#allocation7 + $0x78] sm:$0xff]  ;;  %v156_v6 = vld [vmem:[#allocation7 + $0x70] sm:$0xff]  ;;  %v155_v7 = vld [vmem:[#allocation7 + $0x68] sm:$0xff] }
  0x17   :  { %158 = vmatpush.msra.mxu1 %v157_v5  ;;  %v154_v8 = vld [vmem:[#allocation7 + $0x60] sm:$0xff]  ;;  %v153_v9 = vld [vmem:[#allocation7 + $0x58] sm:$0xff]  ;;  %v152_v10 = vld [vmem:[#allocation7 + $0x50] sm:$0xff] }
  0x18   :  { %v151_v11 = vld [vmem:[#allocation7 + $0x48] sm:$0xff]  ;;  %v150_v12 = vld [vmem:[#allocation7 + $0x40] sm:$0xff]  ;;  %v149_v13 = vld [vmem:[#allocation7 + $0x38] sm:$0xff] }
  0x19   :  { %129 = vmatpush.bf16.msra.mxu0 %v270_v1  ;;  %159 = vmatpush.msra.mxu1 %v156_v6  ;;  %v148_v14 = vld [vmem:[#allocation7 + $0x30] sm:$0xff]  ;;  %v281_v15 = vld [vmem:[%s473_s2] ss:$0 sm:$0xff]  ;;  %v147_v19 = vld [vmem:[#allocation7 + $0x28] sm:$0xff]  ;;  %s422_s2 = smov [#allocation10]  }
  0x1a   :  { %v146_v20 = vld [vmem:[#allocation7 + $0x20] sm:$0xff]  ;;  %v145_v21 = vld [vmem:[#allocation7 + $0x18] sm:$0xff]  ;;  %v144_v22 = vld [vmem:[#allocation7 + $0x10] sm:$0xff]  ;;  %s237_s15 = sshll.u32 %s422_s2, 4  ;;  %s238_s15 = int_to_ptr.vmem [resolvable:$true] %s237_s15 }
  0x1b   :  { %160 = vmatpush.msra.mxu1 %v155_v7  ;;  %v143_v23 = vld [vmem:[#allocation7 + $0x8] sm:$0xff]  ;;  %v142_v24 = vld [vmem:[#allocation7] sm:$0xff]  ;;  %v209_v25 = vld [vmem:[#allocation8 + $0x78] sm:$0xff] }
  0x1c   :  { %v208_v26 = vld [vmem:[#allocation8 + $0x70] sm:$0xff]  ;;  %210 = vmatpush.msra.mxu2 %v209_v25  ;;  %v207_v27 = vld [vmem:[#allocation8 + $0x68] sm:$0xff]  ;;  %v206_v28 = vld [vmem:[#allocation8 + $0x60] sm:$0xff] }
  0x1d   :  { %130 = vmatpush.bf16.msra.mxu0 %v269_v2  ;;  %161 = vmatpush.msra.mxu1 %v154_v8  ;;  %v205_v29 = vld [vmem:[#allocation8 + $0x58] sm:$0xff]  ;;  %v204_v30 = vld [vmem:[#allocation8 + $0x50] sm:$0xff]  ;;  %v203_v35 = vld [vmem:[#allocation8 + $0x48] sm:$0xff] }
  0x1e   :  { %211 = vmatpush.msra.mxu2 %v208_v26  ;;  %v202_v36 = vld [vmem:[#allocation8 + $0x40] sm:$0xff]  ;;  %v201_v37 = vld [vmem:[#allocation8 + $0x38] sm:$0xff]  ;;  %v200_v38 = vld [vmem:[#allocation8 + $0x30] sm:$0xff] }
  0x1f   :  { %162 = vmatpush.msra.mxu1 %v153_v9  ;;  %v199_v39 = vld [vmem:[#allocation8 + $0x28] sm:$0xff]  ;;  %v198_v40 = vld [vmem:[#allocation8 + $0x20] sm:$0xff]  ;;  %v197_v41 = vld [vmem:[#allocation8 + $0x18] sm:$0xff] }
  0x20   :  { %212 = vmatpush.msra.mxu2 %v207_v27  ;;  %v196_v42 = vld [vmem:[#allocation8 + $0x10] sm:$0xff]  ;;  %v195_v43 = vld [vmem:[#allocation8 + $0x8] sm:$0xff]  ;;  %v194_v44 = vld [vmem:[#allocation8] sm:$0xff] }
  0x21   :  { %131 = vmatpush.bf16.msra.mxu0 %v268_v3  ;;  %163 = vmatpush.msra.mxu1 %v152_v10 }
  0x22   :  { %213 = vmatpush.msra.mxu2 %v206_v28 }
  0x23   :  { %164 = vmatpush.msra.mxu1 %v151_v11 }
  0x24   :  { %267 = vmatmul.msk.bf16.vlgmr.msra.gmra.mxu0 %vm120_vm0, %v83_v4  ;;  %214 = vmatpush.msra.mxu2 %v205_v29 }
  0x25   :  { %165 = vmatpush.msra.mxu1 %v150_v12 }
  0x26   :  { %215 = vmatpush.msra.mxu2 %v204_v30 }
  0x27   :  { %166 = vmatpush.msra.mxu1 %v149_v13 }
  0x28   :  { %216 = vmatpush.msra.mxu2 %v203_v35 }
  0x29   :  { %167 = vmatpush.msra.mxu1 %v148_v14 }
  0x2a   :  { %217 = vmatpush.msra.mxu2 %v202_v36 }
  0x2b   :  { %168 = vmatpush.msra.mxu1 %v147_v19 }
  0x2c   :  { %218 = vmatpush.msra.mxu2 %v201_v37 }
  0x2d   :  { %169 = vmatpush.msra.mxu1 %v146_v20 }
  0x2e   :  { %219 = vmatpush.msra.mxu2 %v200_v38 }
  0x2f   :  { %170 = vmatpush.msra.mxu1 %v145_v21 }
  0x30   :  { %220 = vmatpush.msra.mxu2 %v199_v39 }
  0x31   :  { %171 = vmatpush.msra.mxu1 %v144_v22 }
  0x32   :  { %221 = vmatpush.msra.mxu2 %v198_v40 }
  0x33   :  { %172 = vmatpush.msra.mxu1 %v143_v23 }
  0x34   :  { %222 = vmatpush.msra.mxu2 %v197_v41 }
  0x35   :  { %173 = vmatpush.msra.mxu1 %v142_v24 }
  0x36   :  { %223 = vmatpush.msra.mxu2 %v196_v42 }
  0x38   :  { %224 = vmatpush.msra.mxu2 %v195_v43 }
  0x3a   :  { %225 = vmatpush.msra.mxu2 %v194_v44 }
  0xa1   :  { %v133_v16 = vpop.f32.mrf.mxu0 }
  0xa2   :  { %v134_v17 = vadd.f32 %v281_v15, %v133_v16 }
  0xa4   :  { %137 = vmax.xlane.f32.xlu0 %v134_v17 }
  0xa9   :  { %v135_v18 = vpop.f32.mrf.mxu0 }
 0x117   :  { %v138_v31 = vpop.xlane.xlu0 %137 }
 0x118   :  { %v139_v32 = vsub.f32 %v134_v17, %v138_v31 }
 0x11a   :  { %v140_v33 = vmul.f32 1.442695, %v139_v32 }
 0x11c   :  { %282 = vpow2.f32 %v140_v33 }
 0x122   :  { %v283_v34 = vpop.eup %282 }
 0x123   :  { %174 = vmatmul.f32.vlgmr.msra.gmra.mxu1 %v283_v34 }
 0x1a0   :  { %v175_v45 = vpop.f32.mrf.mxu1 }
 0x1a1   :  { %v178_v46 = vmax.f32 %v175_v45, 1e-30 }
 0x1a3   :  { %284 = vrcp.f32 %v178_v46  ;;  %v190_v50 = vand.u32 2147483648, %v178_v46  ;;  %v188_v52 = vand.u32 2147483647, %v178_v46  ;;  %vm184_vm2 = vweird.f32 %v178_v46 }
 0x1a5   :  { %v191_v54 = vor.u32 1.1754944e-38, %v190_v50  ;;  %vm189_vm4 = vcmp.eq.f32.partialorder %v188_v52, 8.507059e+37 }
 0x1a9   :  { %v285_v47 = vpop.eup %284 }
 0x1aa   :  { %v180_v48 = vmul.f32 %v285_v47, %v178_v46  ;;  %vm185_vm1 = vweird.f32 %v285_v47 }
 0x1ab   :  { %vm186_vm3 = vmor %vm184_vm2, %vm185_vm1 }
 0x1ac   :  { %v181_v49 = vsub.f32 1.0, %v180_v48 }
 0x1ae   :  { %v182_v51 = vmul.f32 %v285_v47, %v181_v49 }
 0x1b0   :  { %v183_v53 = vadd.f32 %v285_v47, %v182_v51 }
 0x1b2   :  { %v187_v55 = vsel %vm186_vm3, %v285_v47, %v183_v53 }
 0x1b3   :  { %v192_v56 = vsel %vm189_vm4, %v191_v54, %v187_v55 }
 0x1b4   :  { %226 = vmatmul.f32.vlgmr.msra.gmra.mxu2 %v192_v56 }
 0x237   :  { %v227_v57 = vpop.f32.mrf.mxu2 }
 0x238   :  { %v230_v58 = vmul.f32 %v283_v34, %v227_v57 }
 0x23a   :  { %231 = vst [vmem:[#allocation10] sm:$0xff] %v230_v58 }
 0x23b   :  { %242 = dma.vmem_to_hbm [thread:$0]  %s238_s15, 128, %s240_s18, [#allocation4]  }
 0x23c   :  { %412 = dma.done.wait [#allocation4], 128  }
 0x23d   :  { %413 = vsyncadd [#allocation4], 4294967168 }
 0x23e   :  { %247 = vsyncpa [#allocation3], 1 }
 0x23f   :  { %248 = vsyncpa [#allocation6], 1 }
 0x240   :  { %249 = vsyncpa [#allocation9], 1 }
 0x241   :  { %250 = vsyncpa [#allocation4], 1 }

</bundles_post_ra>
